<compile_context>
chip_gen: v7x
topology: tpu7x:2x2x1
jax: 0.10.0
libtpu: 0.0.40
codegen_flags: <defaults>
</compile_context>

<pallas_src>
import functools
import math

import jax
import jax.numpy as jnp
from jax.experimental import pallas as pl
from jax.experimental.pallas import tpu as pltpu


def _sdpa_kernel(q_ref, k_ref, v_ref, out_ref, attn_ref, scores_ref, *, scale):
    # q_ref: (1, TQ, Dk)   k_ref: (1, Tk, Dk)   v_ref: (1, Tk, Dv)
    q = q_ref[0]                                   # (TQ, Dk)
    k = k_ref[0]                                   # (Tk, Dk)
    v = v_ref[0]                                   # (Tk, Dv)

    # scores = (q @ k^T) / temperature.  Contract both operands on their last
    # (Dk) axis so k stays in its stored (Tk, Dk) layout.
    s = jax.lax.dot_general(
        q, k,
        dimension_numbers=(((1,), (1,)), ((), ())),
        preferred_element_type=jnp.float32,
    ) * scale                                      # (TQ, Tk), f32

    scores_ref[0] = s.astype(scores_ref.dtype)     # pre-softmax logits (attn_logprob)

    # Exact row softmax over the key axis (full key range is in VMEM).
    m = jnp.max(s, axis=-1, keepdims=True)
    e = jnp.exp(s - m)                             # EUP
    p = e / jnp.sum(e, axis=-1, keepdims=True)     # (TQ, Tk), f32

    attn_ref[0] = p.astype(attn_ref.dtype)
    out_ref[0] = jnp.dot(
        p.astype(v.dtype), v, preferred_element_type=jnp.float32
    ).astype(out_ref.dtype)


def _pick_query_tile(Tq, Tk, Dk, Dv, itemsize, vmem_budget_bytes=40 * 1024 * 1024):
    """Largest aligned query tile that divides Tq and fits the VMEM budget."""
    def vmem_bytes(tq):
        # Double-buffered pipelined blocks (inputs + outputs) plus f32 temps.
        blocks = 2 * (tq * Dk + Tk * Dk + Tk * Dv + tq * Dv + 2 * tq * Tk) * itemsize
        temps = 3 * tq * Tk * 4  # s, e, p in f32
        return blocks + temps

    for cand in (512, 256, 128):
        if Tq >= cand and Tq % cand == 0 and vmem_bytes(cand) <= vmem_budget_bytes:
            return cand
    return Tq  # full extent (block == full dim satisfies the (8,128) rule)


def scaled_dot_product_attention(q, k, v, temperature,
                                 key_mask=None, query_mask=None,
                                 mapping_mask=None, attn_prior=None):
    """Pallas forward of ScaledDotProductAttention.

    q: (B, Tq, Dk)   k: (B, Tk, Dk)   v: (B, Tk, Dv)
    returns (output (B,Tq,Dv), attn (B,Tq,Tk), attn_logprob (B,1,Tq,Tk))
    """
    # TODO(synk): optional key_mask / query_mask / mapping_mask / attn_prior
    # branches of the PyTorch forward are not lowered into this kernel.
    if any(x is not None for x in (key_mask, query_mask, mapping_mask, attn_prior)):
        raise NotImplementedError("mask / attn_prior paths not implemented in the Pallas kernel")

    B, Tq, Dk = q.shape
    Bk, Tk, Dk_k = k.shape
    Bv, Tk_v, Dv = v.shape
    assert B == Bk == Bv and Dk == Dk_k and Tk == Tk_v

    itemsize = q.dtype.itemsize
    TQ = _pick_query_tile(Tq, Tk, Dk, Dv, itemsize)
    grid = (B, Tq // TQ)

    scale = 1.0 / float(temperature)
    kernel = functools.partial(_sdpa_kernel, scale=scale)

    flops = 2 * B * Tq * Tk * Dk + 2 * B * Tq * Tk * Dv
    bytes_accessed = (
        (q.size + k.size + v.size) * itemsize
        + B * Tq * Dv * itemsize            # output
        + 2 * B * Tq * Tk * itemsize        # attn + scores
    )

    out, attn, scores = pl.pallas_call(
        kernel,
        out_shape=(
            jax.ShapeDtypeStruct((B, Tq, Dv), q.dtype),
            jax.ShapeDtypeStruct((B, Tq, Tk), q.dtype),
            jax.ShapeDtypeStruct((B, Tq, Tk), q.dtype),
        ),
        grid_spec=pltpu.PrefetchScalarGridSpec(
            num_scalar_prefetch=0,
            grid=grid,
            in_specs=[
                pl.BlockSpec((1, TQ, Dk), lambda b, i: (b, i, 0)),   # q tile
                pl.BlockSpec((1, Tk, Dk), lambda b, i: (b, 0, 0)),   # full K (resident per batch)
                pl.BlockSpec((1, Tk, Dv), lambda b, i: (b, 0, 0)),   # full V (resident per batch)
            ],
            out_specs=[
                pl.BlockSpec((1, TQ, Dv), lambda b, i: (b, i, 0)),   # output
                pl.BlockSpec((1, TQ, Tk), lambda b, i: (b, i, 0)),   # softmax probs
                pl.BlockSpec((1, TQ, Tk), lambda b, i: (b, i, 0)),   # pre-softmax logits
            ],
        ),
        compiler_params=pltpu.CompilerParams(
            dimension_semantics=("parallel", "parallel"),
            vmem_limit_bytes=64 * 1024 * 1024,
        ),
        cost_estimate=pl.CostEstimate(
            flops=flops,
            transcendentals=B * Tq * Tk,
            bytes_accessed=bytes_accessed,
        ),
    )(q, k, v)

    attn_logprob = scores[:, None, :, :]   # == scores.unsqueeze(1) (pre-softmax)
    return out, attn, attn_logprob


if __name__ == "__main__":
    key = jax.random.PRNGKey(0)
    kq, kk, kv = jax.random.split(key, 3)

    B, Tq, Tk, Dk, Dv = 2, 16, 16, 32, 32
    temperature = math.sqrt(Dk)

    q = jax.random.normal(kq, (B, Tq, Dk), dtype=jnp.float32)
    k = jax.random.normal(kk, (B, Tk, Dk), dtype=jnp.float32)
    v = jax.random.normal(kv, (B, Tk, Dv), dtype=jnp.float32)

    out, attn, attn_logprob = scaled_dot_product_attention(q, k, v, temperature)
    jax.block_until_ready((out, attn, attn_logprob))

    # Pure-JAX reference (default path: no masks, no prior).
    scores_ref = jnp.einsum("bqd,bkd->bqk", q, k) / temperature
    attn_ref = jax.nn.softmax(scores_ref, axis=-1)
    out_ref = jnp.einsum("bqk,bkd->bqd", attn_ref, v)

    assert out.shape == (B, Tq, Dv)
    assert attn.shape == (B, Tq, Tk)
    assert attn_logprob.shape == (B, 1, Tq, Tk)
    assert jnp.allclose(attn_logprob[:, 0], scores_ref, atol=1e-5, rtol=1e-5)
    assert jnp.allclose(attn, attn_ref, atol=1e-5, rtol=1e-5)
    assert jnp.allclose(out, out_ref, atol=1e-5, rtol=1e-5)

    print("KERNEL_OK")
</pallas_src>

<mosaic_0001>
module attributes {stable_mosaic.version = 11 : i64} {
  func.func @_sdpa_kernel(%arg0: i32, %arg1: i32, %arg2: memref<1x16x32xf32, #tpu.memory_space<vmem>>, %arg3: memref<1x16x32xf32, #tpu.memory_space<vmem>>, %arg4: memref<1x16x32xf32, #tpu.memory_space<vmem>>, %arg5: memref<1x16x32xf32, #tpu.memory_space<vmem>>, %arg6: memref<1x16x16xf32, #tpu.memory_space<vmem>>, %arg7: memref<1x16x16xf32, #tpu.memory_space<vmem>>) attributes {dimension_semantics = [#tpu.dimension_semantics<parallel>, #tpu.dimension_semantics<parallel>], iteration_bounds = array<i64: 2, 1>, scalar_prefetch = 0 : i64, scratch_operands = 0 : i64, tpu.core_type = #tpu.core_type<tc>, window_params = [{transform_indices = @transform_0, window_bounds = array<i64: 1, 16, 32>}, {transform_indices = @transform_1, window_bounds = array<i64: 1, 16, 32>}, {transform_indices = @transform_2, window_bounds = array<i64: 1, 16, 32>}, {transform_indices = @transform_3, window_bounds = array<i64: 1, 16, 32>}, {transform_indices = @transform_4, window_bounds = array<i64: 1, 16, 16>}, {transform_indices = @transform_5, window_bounds = array<i64: 1, 16, 16>}]} {
    %c0 = arith.constant 0 : index
    %c0_0 = arith.constant 0 : index
    %c0_1 = arith.constant 0 : index
    %0 = vector.load %arg2[%c0, %c0_0, %c0_1] : memref<1x16x32xf32, #tpu.memory_space<vmem>>, vector<1x16x32xf32>
    %1 = vector.shape_cast %0 : vector<1x16x32xf32> to vector<16x32xf32>
    %c0_2 = arith.constant 0 : index
    %c0_3 = arith.constant 0 : index
    %c0_4 = arith.constant 0 : index
    %2 = vector.load %arg3[%c0_2, %c0_3, %c0_4] : memref<1x16x32xf32, #tpu.memory_space<vmem>>, vector<1x16x32xf32>
    %3 = vector.shape_cast %2 : vector<1x16x32xf32> to vector<16x32xf32>
    %c0_5 = arith.constant 0 : index
    %c0_6 = arith.constant 0 : index
    %c0_7 = arith.constant 0 : index
    %4 = vector.load %arg4[%c0_5, %c0_6, %c0_7] : memref<1x16x32xf32, #tpu.memory_space<vmem>>, vector<1x16x32xf32>
    %5 = vector.shape_cast %4 : vector<1x16x32xf32> to vector<16x32xf32>
    %cst = arith.constant dense<0.000000e+00> : vector<16x16xf32>
    %6 = tpu.matmul %1, %3, %cst {dimension_numbers = #tpu.dot_dimension_numbers<[1], [1], [0], [0], [0, 0, 1, 0], [], []>} : vector<16x32xf32>, vector<16x32xf32>, vector<16x16xf32> -> vector<16x16xf32>
    %cst_8 = arith.constant 0.176776692 : f32
    %7 = vector.broadcast %cst_8 : f32 to vector<16x16xf32>
    %8 = arith.mulf %6, %7 : vector<16x16xf32>
    %c0_9 = arith.constant 0 : index
    %c0_10 = arith.constant 0 : index
    %c0_11 = arith.constant 0 : index
    %9 = vector.load %arg7[%c0_9, %c0_10, %c0_11] : memref<1x16x16xf32, #tpu.memory_space<vmem>>, vector<1x16x16xf32>
    %10 = vector.shape_cast %9 : vector<1x16x16xf32> to vector<16x16xf32>
    %11 = vector.shape_cast %8 : vector<16x16xf32> to vector<1x16x16xf32>
    tpu.vector_store %arg7[%c0_9, %c0_10, %c0_11], %11 {strides = array<i32>} : memref<1x16x16xf32, #tpu.memory_space<vmem>>, vector<1x16x16xf32>,
    %cst_12 = arith.constant dense<0xFF800000> : vector<16xf32>
    %12 = vector.multi_reduction <maximumf>, %8, %cst_12 [1] : vector<16x16xf32> to vector<16xf32>
    %13 = vector.shape_cast %12 : vector<16xf32> to vector<16x1xf32>
    %14 = vector.broadcast %13 : vector<16x1xf32> to vector<16x16xf32>
    %15 = arith.subf %8, %14 : vector<16x16xf32>
    %16 = math.exp %15 : vector<16x16xf32>
    %cst_13 = arith.constant dense<0.000000e+00> : vector<16xf32>
    %17 = vector.multi_reduction <add>, %16, %cst_13 [1] : vector<16x16xf32> to vector<16xf32>
    %18 = vector.shape_cast %17 : vector<16xf32> to vector<16x1xf32>
    %19 = vector.broadcast %18 : vector<16x1xf32> to vector<16x16xf32>
    %20 = arith.divf %16, %19 : vector<16x16xf32>
    %c0_14 = arith.constant 0 : index
    %c0_15 = arith.constant 0 : index
    %c0_16 = arith.constant 0 : index
    %21 = vector.load %arg6[%c0_14, %c0_15, %c0_16] : memref<1x16x16xf32, #tpu.memory_space<vmem>>, vector<1x16x16xf32>
    %22 = vector.shape_cast %21 : vector<1x16x16xf32> to vector<16x16xf32>
    %23 = vector.shape_cast %20 : vector<16x16xf32> to vector<1x16x16xf32>
    tpu.vector_store %arg6[%c0_14, %c0_15, %c0_16], %23 {strides = array<i32>} : memref<1x16x16xf32, #tpu.memory_space<vmem>>, vector<1x16x16xf32>,
    %cst_17 = arith.constant dense<0.000000e+00> : vector<16x32xf32>
    %24 = tpu.matmul %20, %5, %cst_17 {dimension_numbers = #tpu.dot_dimension_numbers<[1], [0], [0], [1], [0, 0, 1, 1], [], []>} : vector<16x16xf32>, vector<16x32xf32>, vector<16x32xf32> -> vector<16x32xf32>
    %c0_18 = arith.constant 0 : index
    %c0_19 = arith.constant 0 : index
    %c0_20 = arith.constant 0 : index
    %25 = vector.load %arg5[%c0_18, %c0_19, %c0_20] : memref<1x16x32xf32, #tpu.memory_space<vmem>>, vector<1x16x32xf32>
    %26 = vector.shape_cast %25 : vector<1x16x32xf32> to vector<16x32xf32>
    %27 = vector.shape_cast %24 : vector<16x32xf32> to vector<1x16x32xf32>
    tpu.vector_store %arg5[%c0_18, %c0_19, %c0_20], %27 {strides = array<i32>} : memref<1x16x32xf32, #tpu.memory_space<vmem>>, vector<1x16x32xf32>,
    return
  }
  func.func @transform_0(%arg0: i32, %arg1: i32) -> (i32, i32, i32) {
    %c0_i32 = arith.constant 0 : i32
    %c0_i32_0 = arith.constant 0 : i32
    return %arg0, %arg1, %c0_i32 : i32, i32, i32
  }
  func.func @transform_1(%arg0: i32, %arg1: i32) -> (i32, i32, i32) {
    %c0_i32 = arith.constant 0 : i32
    %c0_i32_0 = arith.constant 0 : i32
    %c0_i32_1 = arith.constant 0 : i32
    return %arg0, %c0_i32, %c0_i32_0 : i32, i32, i32
  }
  func.func @transform_2(%arg0: i32, %arg1: i32) -> (i32, i32, i32) {
    %c0_i32 = arith.constant 0 : i32
    %c0_i32_0 = arith.constant 0 : i32
    %c0_i32_1 = arith.constant 0 : i32
    return %arg0, %c0_i32, %c0_i32_0 : i32, i32, i32
  }
  func.func @transform_3(%arg0: i32, %arg1: i32) -> (i32, i32, i32) {
    %c0_i32 = arith.constant 0 : i32
    %c0_i32_0 = arith.constant 0 : i32
    return %arg0, %arg1, %c0_i32 : i32, i32, i32
  }
  func.func @transform_4(%arg0: i32, %arg1: i32) -> (i32, i32, i32) {
    %c0_i32 = arith.constant 0 : i32
    %c0_i32_0 = arith.constant 0 : i32
    return %arg0, %arg1, %c0_i32 : i32, i32, i32
  }
  func.func @transform_5(%arg0: i32, %arg1: i32) -> (i32, i32, i32) {
    %c0_i32 = arith.constant 0 : i32
    %c0_i32_0 = arith.constant 0 : i32
    return %arg0, %arg1, %c0_i32 : i32, i32, i32
  }
}

</mosaic_0001>

<bundles_post_ra>
// kernel: tpu_custom_call.1
= control target key start
LH: loop header
LB: loop body
LE: loop exit
PB: predicated region body
PF: predicated region fallthrough
CT: control target
= control target key end

     0   :  { %s1665_s0 = inlined_call_operand.hbm [shape: f32[2,16,32], index: 0, kind: input, shape index: {}]   ;;  %s1666_s1 = inlined_call_operand.hbm [shape: f32[2,16,32], index: 1, kind: input, shape index: {}]   ;;  %s1667_s2 = inlined_call_operand.hbm [shape: f32[2,16,32], index: 2, kind: input, shape index: {}]   ;;  %s1668_s3 = inlined_call_operand.hbm [shape: f32[2,16,32], index: 3, kind: output, shape index: {0}]   ;;  %s1669_s4 = inlined_call_operand.hbm [shape: f32[2,16,16], index: 4, kind: output, shape index: {1}]   ;;  %s1670_s5 = inlined_call_operand.hbm [shape: f32[2,16,16], index: 5, kind: output, shape index: {2}]  }
   0x1   :  { %1684 = sst [smem:[#allocation21_spill]] %s1666_s1 }
   0x2   :  { %11 = vsyncpa [#allocation3], 0 }
   0x3   :  { %13 = vsyncpa [#allocation3 + $0x1], 0 }
   0x4   :  { %14 = vsyncpa [#allocation6], 0 }
   0x5   :  { %16 = vsyncpa [#allocation6 + $0x1], 0 }
   0x6   :  { %17 = vsyncpa [#allocation4], 0 }
   0x7   :  { %19 = vsyncpa [#allocation4 + $0x1], 0 }
   0x8   :  { %20 = vsyncpa [#allocation10], 0 }
   0x9   :  { %22 = vsyncpa [#allocation10 + $0x1], 0  ;;  %s1276_s18 = smov 0   ;;  %s1278_s19 = smov 0  }
   0xa   :  { %s1280_s20 = smov 0   ;;  %s1282_s21 = smov 0  }
   0xb   :  { %s1284_s22 = smov 0   ;;  %s1286_s23 = smov 0  }
   0xc LB: > { %1685 = sst [smem:[#allocation16_spill]] %s1230_s22  ;;  %s1307_s24 = sadd.s32 4294967295, %s1234_s23   ;;  %s1234_s23 = sphi %s1286_s23, %s28_s23   ;;  %s1230_s22 = sphi %s1284_s22, %s1713_s22   ;;  %s1226_s21 = sphi %s1282_s21, %s1712_s21   ;;  %s1222_s20 = sphi %s1280_s20, %s1716_s20   ;;  %s1218_s19 = sphi %s1278_s19, %s1715_s19   ;;  %s1214_s18 = sphi %s1276_s18, %s1714_s18  }
   0xd   : > { %1686 = sst [smem:[#allocation17_spill]] %s1234_s23  ;;  %s1671_s25 = sadd.s32 4294967294, %s1234_s23  }
   0xe   : > { %s40_s26 = sadd.s32 1, %s1230_s22  ;;  %s49_s27 = sadd.s32 1, %s1222_s20 }
   0xf   : > { %p42_p0 = scmp.ge.s32.totalorder %s40_s26, 2  ;;  %p56_p1 = scmp.ne.s32.totalorder %s1222_s20, %s1218_s19 }
  0x10   : > { %p57_p2 = scmp.eq.s32.totalorder %s1234_s23, 0  ;;  %p62_p3 = scmp.ne.s32.totalorder %s1218_s19, %s1214_s18 }
  0x11   : > { %s1718_s26 = smov (%p42_p0, %s40_s26), 0  ;;  %p63_p5 = scmp.eq.s32.totalorder %s1307_s24, 0 }
  0x12   : > { %1687 = sst [smem:[#allocation18_spill]] %s1718_s26  ;;  %p1319_p4 = por %p57_p2, %p56_p1 }
  0x13   : > { %s44_s29 = ssub.s32 %s1230_s22, %s1718_s26  ;;  %p140_p6 = scmp.eq.s32.totalorder %s1307_s24, 1 }
  0x14   : > { %p47_p7 = scmp.eq.s32.totalorder %s44_s29, 0  ;;  %p1327_p8 = por %p63_p5, %p62_p3 }
  0x15   : > { %p1331_p9 = por %p140_p6, %p56_p1  ;;  %p146_p10 = scmp.eq.s32.totalorder %s1671_s25, 1 }
  0x16   : > { %s1689_s30 = scalar_select %p1327_p8, 1, 0 }
  0x17   : > { %s1690_s6 = scalar_select %p1331_p9, 1, 0 }
  0x18   : > { %s1338_s7 = scalar_select %p47_p7, %s1222_s20, %s49_s27  }
  0x19   : > { %p1340_p11 = por %p146_p10, %p62_p3  ;;  %p936_p13 = scmp.lt.s32.totalorder %s1234_s23, 2 }
  0x1a   : > { %1691 = sst [smem:[#allocation19_spill]] %s1338_s7  ;;  %s1672_s9 = sand.u32 1, %s1222_s20  }
  0x1b   : > { %s1692_s8 = scalar_select %p1340_p11, 1, 0 }
  0x1c   : > { %s1349_s10 = sshll.u32 %s1672_s9, 4  ;;  %s1352_s11 = sshll.u32 %s1230_s22, 8 }
  0x1d   : > { %1693 = sst [smem:[#allocation20_spill]] %s1692_s8  ;;  %p1356_p0 = pnand %p936_p13, %p1319_p4 }
  0x1e   : > { %s245_s13 = sand.u32 1, %s1234_s23   ;;  %s1695_s1 = sld [smem:[#allocation21_spill]] }
  0x1f   : > { %s249_s17 = scalar_lea.vmem [#allocation5], %s1349_s10  ;;  %s1372_s28 = scalar_lea.sflag [#allocation6], %s245_s13 }
  0x20   : > { %s256_s27 = sshll.u32 %s249_s17, 4  ;;  %p1378_p4 = pneg %p1356_p0  ;;  %s1369_s27 = int_to_ptr.vmem [resolvable:$true] %s256_s27 }
  0x24   : > { %s1365_s16 = scalar_lea.hbm %s1695_s1, %s1352_s11  ;;  %s1003_s17 = scalar_lea.hbm %s1695_s1, 512 }
  0x25   : > { %s998_s29 = scalar_lea.hbm %s1365_s16, 256  ;;  %p1004_p7 = scmp.lt.u32.totalorder %s1365_s16, %s1695_s1 }
  0x26   : > { %p999_p3 = scmp.ne.s32.totalorder %s1365_s16, %s998_s29  ;;  %p1005_p10 = scmp.lt.u32.totalorder %s1003_s17, %s998_s29 }
  0x27   : > { %p1007_p12 = scmp.lt.u32.totalorder %s998_s29, %s1365_s16 }
  0x28   : > { %p1001_p5 = pnand %p1378_p4, %p999_p3  ;;  %p1006_p13 = por %p1005_p10, %p1004_p7 }
  0x2a   : > { %p1002_p6 = pneg %p1001_p5  ;;  %p1008_p1 = por %p1007_p12, %p1006_p13 }
  0x2c   : > { %p1009_p2 = pnand %p1008_p1, %p1002_p6 }
  0x2e   : > { %1012 = shalt.err (!%p1009_p2)
}
  0x2f   : > { %s1013_s13 = scalar_lea.vmem %s1369_s27, 256  ;;  %s1236_s14 = smov [#allocation5]  }
  0x30   : > { %p1014_p3 = scmp.ne.s32.totalorder %s1369_s27, %s1013_s13  ;;  %s1018_s15 = sshll.u32 %s1236_s14, 4  ;;  %s1019_s15 = int_to_ptr.vmem [resolvable:$false] %s1018_s15 }
  0x31   : > { %s1020_s26 = scalar_lea.vmem %s1019_s15, 512  ;;  %p1021_p9 = scmp.lt.s32.totalorder %s1369_s27, %s1019_s15 }
  0x32   : > { %p1016_p5 = pnand %p1014_p3, %p1378_p4  ;;  %p1022_p8 = scmp.lt.s32.totalorder %s1020_s26, %s1013_s13 }
  0x34   : > { %p1017_p11 = pneg %p1016_p5  ;;  %p1023_p7 = por %p1022_p8, %p1021_p9 }
  0x36   : > { %p1024_p10 = pnand %p1023_p7, %p1017_p11 }
  0x38   : > { %1027 = shalt.err (!%p1024_p10)
}
  0x39   : > { %s1676_s9 = smov 128   ;;  %s1678_s29 = smov 8  }
  0x3a   : > { %922 = dma.hbm_to_vmem [thread:$0]  (!%p1356_p0), %s1365_s16, 256, %s1369_s27, %s1372_s28, %s1676_s9, %s1676_s9, %s1678_s29  }
  0x3b   : > { %p1697_p8 = scmp.lt.s32.totalorder %s1234_s23, 3  ;;  %p1698_p9 = scmp.ge.s32.totalorder %s1234_s23, 1 }
  0x3c   : > { %s1417_s15 = scalar_lea.hbm %s1665_s0, %s1352_s11  ;;  %s226_s26 = scalar_lea.vmem [#allocation2], %s1349_s10 }
  0x3d   : > { %p1409_p11 = pnand %p1698_p9, %p1697_p8  ;;  %s235_s1 = sshll.u32 %s226_s26, 4  ;;  %s1420_s1 = int_to_ptr.vmem [resolvable:$true] %s235_s1 }
  0x3e   : > { %s1426_s9 = scalar_lea.hbm %s1667_s2, %s1352_s11  ;;  %s1700_s29 = sand.u32 1, %s1222_s20  }
  0x3f   : > { %s1699_s17 = scalar_select %p1409_p11, 1, 0 }
  0x40   : > { %s1430_s22 = scalar_lea.sflag [#allocation3], %s1700_s29  ;;  %s1028_s7 = scalar_lea.hbm %s1417_s15, 256 }
  0x41   : > { %p1029_p12 = scmp.ne.s32.totalorder %s1417_s15, %s1028_s7  ;;  %s1033_s23 = scalar_lea.hbm %s1665_s0, 512 }
  0x42   : > { %p1034_p6 = scmp.lt.u32.totalorder %s1417_s15, %s1665_s0  ;;  %p1035_p13 = scmp.lt.u32.totalorder %s1033_s23, %s1028_s7 }
  0x43   : > { %p1031_p1 = pnand %p1029_p12, %p1378_p4  ;;  %p1037_p5 = scmp.lt.u32.totalorder %s1028_s7, %s1417_s15 }
  0x44   : > { %p1036_p3 = por %p1035_p13, %p1034_p6 }
  0x45   : > { %p1032_p2 = pneg %p1031_p1 }
  0x46   : > { %p1038_p7 = por %p1037_p5, %p1036_p3 }
  0x48   : > { %p1039_p10 = pnand %p1038_p7, %p1032_p2 }
  0x4a   : > { %1042 = shalt.err (!%p1039_p10)
}
  0x4b   : > { %s1043_s11 = scalar_lea.vmem %s1420_s1, 256  ;;  %s1239_s29 = smov [#allocation2]  }
  0x4c   : > { %p1044_p8 = scmp.ne.s32.totalorder %s1420_s1, %s1043_s11  ;;  %s1048_s16 = sshll.u32 %s1239_s29, 4  ;;  %s1049_s16 = int_to_ptr.vmem [resolvable:$false] %s1048_s16 }
  0x4d   : > { %s1050_s8 = scalar_lea.vmem %s1049_s16, 512  ;;  %p1051_p1 = scmp.lt.s32.totalorder %s1420_s1, %s1049_s16 }
  0x4e   : > { %p1046_p9 = pnand %p1044_p8, %p1378_p4  ;;  %p1052_p11 = scmp.lt.s32.totalorder %s1050_s8, %s1043_s11 }
  0x50   : > { %p1047_p12 = pneg %p1046_p9  ;;  %p1053_p6 = por %p1052_p11, %p1051_p1 }
  0x52   : > { %p1054_p13 = pnand %p1053_p6, %p1047_p12 }
  0x54   : > { %1057 = shalt.err (!%p1054_p13)
}
  0x55   : > { %s1701_s23 = smov 8   ;;  %s1702_s7 = smov 128  }
  0x56   : > { %919 = dma.hbm_to_vmem [thread:$0]  (!%p1356_p0), %s1417_s15, 256, %s1420_s1, %s1430_s22, %s1702_s7, %s1702_s7, %s1701_s23  }
  0x57   : > { %s270_s27 = scalar_lea.vmem [#allocation7], %s1349_s10  ;;  %s1058_s14 = scalar_lea.hbm %s1426_s9, 256 }
  0x58   : > { %s277_s13 = sshll.u32 %s270_s27, 4  ;;  %p1059_p11 = scmp.ne.s32.totalorder %s1426_s9, %s1058_s14  ;;  %s1458_s13 = int_to_ptr.vmem [resolvable:$true] %s277_s13 }
  0x59   : > { %s1063_s29 = scalar_lea.hbm %s1667_s2, 512  ;;  %p1064_p5 = scmp.lt.u32.totalorder %s1426_s9, %s1667_s2 }
  0x5a   : > { %p1061_p2 = pnand %p1059_p11, %p1378_p4  ;;  %p1065_p7 = scmp.lt.u32.totalorder %s1063_s29, %s1058_s14 }
  0x5b   : > { %p1067_p8 = scmp.lt.u32.totalorder %s1058_s14, %s1426_s9 }
  0x5c   : > { %p1062_p3 = pneg %p1061_p2  ;;  %p1066_p10 = por %p1065_p7, %p1064_p5 }
  0x5e   : > { %p1068_p9 = por %p1067_p8, %p1066_p10 }
  0x60   : > { %p1069_p12 = pnand %p1068_p9, %p1062_p3 }
  0x62   : > { %1072 = shalt.err (!%p1069_p12)
}
  0x63   : > { %s1073_s1 = scalar_lea.vmem %s1458_s13, 256  ;;  %s1240_s22 = smov [#allocation7]  }
  0x64   : > { %p1074_p1 = scmp.ne.s32.totalorder %s1458_s13, %s1073_s1  ;;  %s1078_s10 = sshll.u32 %s1240_s22, 4  ;;  %s1079_s10 = int_to_ptr.vmem [resolvable:$false] %s1078_s10 }
  0x65   : > { %s1080_s15 = scalar_lea.vmem %s1079_s10, 512  ;;  %p1081_p11 = scmp.lt.s32.totalorder %s1458_s13, %s1079_s10 }
  0x66   : > { %p1076_p6 = pnand %p1074_p1, %p1378_p4  ;;  %p1082_p2 = scmp.lt.s32.totalorder %s1080_s15, %s1073_s1 }
  0x68   : > { %p1077_p13 = pneg %p1076_p6  ;;  %p1083_p5 = por %p1082_p2, %p1081_p11 }
  0x6a   : > { %p1084_p7 = pnand %p1083_p5, %p1077_p13 }
  0x6c   : > { %1087 = shalt.err (!%p1084_p7)
}
  0x6d   : > { %925 = dma.hbm_to_vmem [thread:$0]  (!%p1356_p0), %s1426_s9, 256, %s1458_s13, %s1372_s28, %s1702_s7, %s1702_s7, %s1701_s23  }
  0x6e   : > { %p1703_p4 = scmp.ne.s32.totalorder %s1699_s17, 0 }
  0x6f   : > { %s1488_s25 = sand.u32 (!%p1703_p4), 1, %s1218_s19   ;;  %p1704_p3 = scmp.ne.s32.totalorder (!%p1703_p4), %s1689_s30, 0 }
  0x70   : > { %289 = sbr.rel (%p1703_p4) target bundleno = 894 (0x37e), region = 32  ;;  %s1491_s27 = sshll.u32 (!%p1703_p4), %s1488_s25, 4 }
  0x71   : > { %s292_s12 = scalar_lea.sflag (!%p1703_p4), [#allocation3], %s1488_s25  ;;  %s295_s14 = scalar_lea.vmem (!%p1703_p4), [#allocation2], %s1491_s27 }
  0x77   : > { %1197 = dma.done.wait (%p1704_p3), %s292_s12, 256  }
  0x78   : > { %1199 = vsyncadd (%p1704_p3), %s292_s12, 4294967040  ;;  %s300_s28 = sand.u32 1, %s1307_s24   ;;  %s304_s17 = scalar_lea.vmem [#allocation5], %s1491_s27 }
  0x79   : > { %s301_s9 = scalar_lea.sflag [#allocation6], %s300_s28 }
  0x7a   : > { %1201 = dma.done.wait (%p1704_p3), %s301_s9, 512  }
  0x7b   : > { %1203 = vsyncadd (%p1704_p3), %s301_s9, 4294966784  ;;  %vm370_vm0 = vcmask 261120   ;;  %v366_v0 = vld [vmem:[%s304_s17] sm:$0xff]  ;;  %v367_v1 = vld [vmem:[%s304_s17 + $0x8] sm:$0xff]  ;;  %vm460_vm2 = vcmask 130048   ;;  %s1512_s30 = scalar_lea.vmem [#allocation11], %s1491_s27 }
  0x7c   : > { %vm895_vm1 = vmpackc.low %vm370_vm0, %vm370_vm0  ;;  %v364_v2 = vld [vmem:[%s295_s14] sm:$0xff]  ;;  %v894_v3 = vpack.c.bf16 %v367_v1, %v366_v0  ;;  %v365_v4 = vld [vmem:[%s295_s14 + $0x8] sm:$0xff]  ;;  %s313_s23 = scalar_lea.vmem [#allocation7], %s1491_s27  ;;  %s352_s7 = scalar_lea.vmem [#allocation9], %s1491_s27 }
  0x7d   : > { %884 = vmatprep.mubr.msk.f32.mxu0 %vm370_vm0, %v364_v2  ;;  %v368_v21 = vld [vmem:[%s313_s23] sm:$0xff]  ;;  %v369_v22 = vld [vmem:[%s313_s23 + $0x8] sm:$0xff]  ;;  %s1529_s13 = sshll.u32 %s1226_s21, 8  ;;  %s632_s26 = sshll.u32 %s1512_s30, 4  ;;  %s1538_s26 = int_to_ptr.vmem [resolvable:$true] %s632_s26 }
  0x7e   : > { %896 = vmatprep.subr.msk.bf16.mxu0 %vm895_vm1, %v894_v3  ;;  %v900_v23 = vpack.c.bf16 %v369_v22, %v368_v21  ;;  %s614_s11 = sshll.u32 %s352_s7, 4  ;;  %s1536_s8 = scalar_lea.hbm %s1669_s4, %s1529_s13  ;;  %s1540_s11 = int_to_ptr.vmem [resolvable:$true] %s614_s11 }
  0x7f   : > { %899 = vmatpush3.bf16.xpose.msk.msra.mxu0 %vm895_vm1, %v894_v3  ;;  %s1544_s1 = scalar_lea.sflag [#allocation10], %s300_s28  ;;  %s1088_s21 = scalar_lea.vmem %s1540_s11, 256 }
  0x80   : > { %901 = vmatprep.subr.bf16.mxu1 %v900_v23  ;;  %p1089_p0 = scmp.ne.s32.totalorder %s1540_s11, %s1088_s21  ;;  %p1705_p10 = scmp.ne.s32.totalorder %s1690_s6, 0 }
  0x81   : > { %903 = vmatpush3.bf16.msra.mxu1 %v900_v23  ;;  %s1241_s22 = smov [#allocation9]  }
  0x82   : > { %p1090_p8 = pnand %p1089_p0, %p1705_p10  ;;  %s1092_s10 = sshll.u32 %s1241_s22, 4  ;;  %s1093_s10 = int_to_ptr.vmem [resolvable:$false] %s1092_s10 }
  0x83   : > { %s1094_s15 = scalar_lea.vmem %s1093_s10, 512  ;;  %p1095_p12 = scmp.lt.s32.totalorder %s1540_s11, %s1093_s10 }
  0x84   : > { %p1091_p9 = pneg %p1090_p8  ;;  %p1096_p1 = scmp.lt.s32.totalorder %s1094_s15, %s1088_s21 }
  0x86   : > { %885 = vmatmul.mubr.msk.f32.vlgmr.msra.gmra.mrb[0].mxu0 %vm370_vm0, %v365_v4  ;;  %p1097_p6 = por %p1096_p1, %p1095_p12 }
  0x88   : > { %p1098_p13 = pnand %p1097_p6, %p1091_p9 }
 0x159   : > { %v886_v5 = vpop.f32.mrb[0].mxu0 }
 0x15a   : > { %v459_v6 = vmul.f32 0.17677669, %v886_v5  ;;  %v449_v7 = vpop.f32.mrb[1].mxu0 }
 0x15b   : > { %v458_v8 = vmul.f32 0.17677669, %v449_v7 }
 0x15c   : > { %462 = vst.msk [vmem:[%s1512_s30 + $0x8] sm:$0xff] %vm460_vm2, %v459_v6  ;;  %v466_v10 = vsel %vm460_vm2, %v459_v6, -inf }
 0x15d   : > { %461 = vst.msk [vmem:[%s1512_s30] sm:$0xff] %vm460_vm2, %v458_v8  ;;  %v463_v9 = vsel %vm460_vm2, %v458_v8, -inf }
 0x15e   : > { %464 = vmax.xlane.f32.xlu0 %v463_v9 }
 0x162   : > { %467 = vmax.xlane.f32.xlu0 %v466_v10 }
 0x1eb   : > { %v465_v11 = vpop.xlane.xlu0 %464 }
 0x1ec   : > { %v469_v12 = vsub.f32 %v458_v8, %v465_v11 }
 0x1ee   : > { %v471_v13 = vmul.f32 1.442695, %v469_v12 }
 0x1ef   : > { %v468_v14 = vpop.xlane.xlu0 %467 }
 0x1f0   : > { %990 = vpow2.f32 %v471_v13  ;;  %v470_v15 = vsub.f32 %v459_v6, %v468_v14 }
 0x1f2   : > { %v473_v16 = vmul.f32 1.442695, %v470_v15 }
 0x1f4   : > { %992 = vpow2.f32 %v473_v16 }
 0x1fa   : > { %v991_v17 = vpop.eup %990 }
 0x1fb   : > { %v475_v18 = vsel %vm460_vm2, %v991_v17, 0.0 }
 0x1fc   : > { %476 = vadd.xlane.f32.xlu1 %v475_v18 }
 0x1fe   : > { %v993_v19 = vpop.eup %992 }
 0x1ff   : > { %v478_v20 = vsel %vm460_vm2, %v993_v19, 0.0 }
 0x200   : > { %479 = vadd.xlane.f32.xlu1 %v478_v20 }
 0x289   : > { %v477_v24 = vpop.xlane.xlu1 %476 }
 0x28a   : > { %994 = vrcp.f32 %v477_v24 }
 0x28d   : > { %v480_v25 = vpop.xlane.xlu1 %479 }
 0x28e   : > { %996 = vrcp.f32 %v480_v25 }
 0x294   : > { %v995_v26 = vpop.eup %994 }
 0x295   : > { %v482_v27 = vmul.f32 %v995_v26, %v991_v17 }
 0x297   : > { %485 = vst.msk [vmem:[%s352_s7] sm:$0xff] %vm460_vm2, %v482_v27  ;;  %891 = vmatprep.mubr.msk.f32.mxu1 %vm460_vm2, %v482_v27 }
 0x298   : > { %v997_v28 = vpop.eup %996 }
 0x299   : > { %v484_v29 = vmul.f32 %v997_v28, %v993_v19 }
 0x29b   : > { %892 = vmatmul.mubr.msk.f32.vlgmr.msra.gmra.mrb[0].mxu1 %vm460_vm2, %v484_v29  ;;  %486 = vst.msk [vmem:[%s352_s7 + $0x8] sm:$0xff] %vm460_vm2, %v484_v29 }
 0x29c   : > { %1101 = shalt.err (!%p1098_p13)
}
 0x29d   : > { %s1102_s24 = scalar_lea.hbm %s1536_s8, 256  ;;  %s1106_s28 = scalar_lea.hbm %s1669_s4, 512 }
 0x29e   : > { %p1103_p11 = scmp.ne.s32.totalorder %s1536_s8, %s1102_s24  ;;  %p1107_p7 = scmp.lt.u32.totalorder %s1536_s8, %s1669_s4 }
 0x29f   : > { %p1108_p4 = scmp.lt.u32.totalorder %s1106_s28, %s1102_s24  ;;  %p1110_p0 = scmp.lt.u32.totalorder %s1102_s24, %s1536_s8 }
 0x2a0   : > { %p1104_p2 = pnand %p1103_p11, %p1705_p10 }
 0x2a1   : > { %p1109_p3 = por %p1108_p4, %p1107_p7 }
 0x2a2   : > { %p1105_p5 = pneg %p1104_p2 }
 0x2a3   : > { %p1111_p8 = por %p1110_p0, %p1109_p3 }
 0x2a5   : > { %p1112_p9 = pnand %p1111_p8, %p1105_p5 }
 0x2a7   : > { %1115 = shalt.err (!%p1112_p9)
}
 0x2a8   : > { %s1242_s30 = smov 128   ;;  %s1243_s23 = smov 8  }
 0x2a9   : > { %911 = dma.vmem_to_hbm [thread:$0]  (%p1705_p10), %s1540_s11, 256, %s1536_s8, %s1544_s1, %s1242_s30, %s1242_s30, %s1243_s23  }
 0x2aa   : > { %s1575_s16 = scalar_lea.hbm %s1670_s5, %s1529_s13  ;;  %s1116_s21 = scalar_lea.vmem %s1538_s26, 256 }
 0x2ab   : > { %p1117_p12 = scmp.ne.s32.totalorder %s1538_s26, %s1116_s21  ;;  %s1244_s22 = smov [#allocation11]  }
 0x2ac   : > { %s1120_s10 = sshll.u32 %s1244_s22, 4  ;;  %s1121_s10 = int_to_ptr.vmem [resolvable:$false] %s1120_s10 }
 0x2ad   : > { %p1118_p1 = pnand %p1117_p12, %p1705_p10  ;;  %s1122_s15 = scalar_lea.vmem %s1121_s10, 512 }
 0x2ae   : > { %p1123_p13 = scmp.lt.s32.totalorder %s1538_s26, %s1121_s10  ;;  %p1124_p11 = scmp.lt.s32.totalorder %s1122_s15, %s1116_s21 }
 0x2af   : > { %p1119_p6 = pneg %p1118_p1 }
 0x2b0   : > { %p1125_p2 = por %p1124_p11, %p1123_p13 }
 0x2b2   : > { %p1126_p5 = pnand %p1125_p2, %p1119_p6 }
 0x2b4   : > { %1129 = shalt.err (!%p1126_p5)
}
 0x2b5   : > { %s1130_s11 = scalar_lea.hbm %s1575_s16, 256  ;;  %s1134_s12 = scalar_lea.hbm %s1670_s5, 512 }
 0x2b6   : > { %p1131_p7 = scmp.ne.s32.totalorder %s1575_s16, %s1130_s11  ;;  %p1135_p0 = scmp.lt.u32.totalorder %s1575_s16, %s1670_s5 }
 0x2b7   : > { %p1136_p8 = scmp.lt.u32.totalorder %s1134_s12, %s1130_s11  ;;  %p1138_p12 = scmp.lt.u32.totalorder %s1130_s11, %s1575_s16 }
 0x2b8   : > { %p1132_p4 = pnand %p1131_p7, %p1705_p10 }
 0x2b9   : > { %p1137_p9 = por %p1136_p8, %p1135_p0 }
 0x2ba   : > { %p1133_p3 = pneg %p1132_p4 }
 0x2bb   : > { %p1139_p1 = por %p1138_p12, %p1137_p9 }
 0x2bd   : > { %p1140_p6 = pnand %p1139_p1, %p1133_p3 }
 0x2bf   : > { %1143 = shalt.err (!%p1140_p6)
}
 0x2c0   : > { %912 = dma.vmem_to_hbm [thread:$0]  (%p1705_p10), %s1538_s26, 256, %s1575_s16, %s1544_s1, %s1242_s30, %s1242_s30, %s1243_s23  }
 0x2c1   : > { %s345_s9 = scalar_lea.vmem [#allocation8], %s1491_s27  ;;  %s1609_s21 = scalar_lea.hbm %s1668_s3, %s1529_s13 }
 0x2c2   : > { %s596_s17 = sshll.u32 %s345_s9, 4  ;;  %s571_s22 = scalar_lea.sflag [#allocation4], %s1488_s25  ;;  %s1603_s17 = int_to_ptr.vmem [resolvable:$true] %s596_s17 }
 0x2c3   : > { %s1144_s26 = scalar_lea.vmem %s1603_s17, 256  ;;  %s1245_s27 = smov [#allocation8]  }
 0x2c4   : > { %p1145_p13 = scmp.ne.s32.totalorder %s1603_s17, %s1144_s26  ;;  %s1148_s1 = sshll.u32 %s1245_s27, 4  ;;  %s1149_s1 = int_to_ptr.vmem [resolvable:$false] %s1148_s1 }
 0x2c5   : > { %s1150_s16 = scalar_lea.vmem %s1149_s1, 512  ;;  %p1151_p5 = scmp.lt.s32.totalorder %s1603_s17, %s1149_s1 }
 0x2c6   : > { %p1146_p11 = pnand %p1145_p13, %p1705_p10  ;;  %p1152_p7 = scmp.lt.s32.totalorder %s1150_s16, %s1144_s26 }
 0x2c8   : > { %p1147_p2 = pneg %p1146_p11  ;;  %p1153_p4 = por %p1152_p7, %p1151_p5 }
 0x2ca   : > { %p1154_p3 = pnand %p1153_p4, %p1147_p2 }
 0x36e   : > { %v893_v30 = vpop.f32.mrb[0].mxu1 }
 0x36f   : > { %569 = vst.msk [vmem:[%s345_s9 + $0x8] sm:$0xff] %vm370_vm0, %v893_v30  ;;  %v559_v31 = vpop.f32.mrb[1].mxu1 }
 0x370   : > { %568 = vst.msk [vmem:[%s345_s9] sm:$0xff] %vm370_vm0, %v559_v31 }
 0x371   : > { %1157 = shalt.err (!%p1154_p3)
}
 0x372   : > { %s1158_s13 = scalar_lea.hbm %s1609_s21, 256  ;;  %s1162_s11 = scalar_lea.hbm %s1668_s3, 512 }
 0x373   : > { %p1159_p0 = scmp.ne.s32.totalorder %s1609_s21, %s1158_s13  ;;  %p1163_p12 = scmp.lt.u32.totalorder %s1609_s21, %s1668_s3 }
 0x374   : > { %p1164_p1 = scmp.lt.u32.totalorder %s1162_s11, %s1158_s13  ;;  %p1166_p13 = scmp.lt.u32.totalorder %s1158_s13, %s1609_s21 }
 0x375   : > { %p1160_p8 = pnand %p1159_p0, %p1705_p10 }
 0x376   : > { %p1165_p6 = por %p1164_p1, %p1163_p12 }
 0x377   : > { %p1161_p9 = pneg %p1160_p8 }
 0x378   : > { %p1167_p11 = por %p1166_p13, %p1165_p6 }
 0x37a   : > { %p1168_p2 = pnand %p1167_p11, %p1161_p9 }
 0x37c   : > { %1171 = shalt.err (!%p1168_p2)
}
 0x37d   : > { %910 = dma.vmem_to_hbm [thread:$0]  (%p1705_p10), %s1603_s17, 256, %s1609_s21, %s571_s22, %s1242_s30, %s1242_s30, %s1243_s23  }
 0x37e PF: > { %s1706_s12 = sld [smem:[#allocation20_spill]]  ;;  %s1707_s14 = sld [smem:[#allocation17_spill]] }
 0x37f   : > { %s647_s28 = sand.u32 1, %s1214_s18  }
 0x380   : > { %s648_s9 = scalar_lea.sflag [#allocation4], %s647_s28 }
 0x384   : > { %p1708_p5 = scmp.ne.s32.totalorder %s1706_s12, 0  ;;  %p1709_p7 = scmp.ge.s32.totalorder %s1707_s14, 2 }
 0x386   : > { %p927_p4 = pnand %p1709_p7, %p1708_p5 }
 0x388   : > { %1205 = dma.done.wait (!%p927_p4), %s648_s9, 256  }
 0x389   : > { %1207 = vsyncadd (!%p927_p4), %s648_s9, 4294967040  ;;  %s1710_s6 = sadd.s32 4294967294, %s1707_s14  }
 0x38a   : > { %s656_s7 = sand.u32 1, %s1710_s6  }
 0x38b   : > { %s657_s29 = scalar_lea.sflag [#allocation10], %s656_s7 }
 0x38c   : > { %1209 = dma.done.wait (!%p927_p4), %s657_s29, 512  }
 0x38d   : > { %1211 = vsyncadd (!%p927_p4), %s657_s29, 4294966784  ;;  %s28_s23 = sadd.s32 1, %s1707_s14   ;;  %s1711_s25 = sld [smem:[#allocation19_spill]] }
 0x38e   : > { %p25_p10 = scmp.ge.s32.totalorder %s28_s23, 4   ;;  %s1712_s21 = sld [smem:[#allocation16_spill]] }
 0x38f   : > { %s1713_s22 = sld [smem:[#allocation18_spill]]  ;;  %s1714_s18 = smov %s1218_s19 }
 0x390   : > { %s1715_s19 = smov %s1222_s20  ;;  %27 = sbr.rel (!%p25_p10) target bundleno = 12 (0xc), region = 133 }
 0x393   : > { %s1716_s20 = smov %s1711_s25 }
 0x397   :  { %671 = vsyncpa [#allocation3], 1 }
 0x398   :  { %673 = vsyncpa [#allocation3 + $0x1], 1 }
 0x399   :  { %674 = vsyncpa [#allocation6], 1 }
 0x39a   :  { %676 = vsyncpa [#allocation6 + $0x1], 1 }
 0x39b   :  { %677 = vsyncpa [#allocation4], 1 }
 0x39c   :  { %679 = vsyncpa [#allocation4 + $0x1], 1 }
 0x39d   :  { %680 = vsyncpa [#allocation10], 1 }
 0x39e   :  { %682 = vsyncpa [#allocation10 + $0x1], 1 }

</bundles_post_ra>
